<compile_context>
chip_gen: v6e
topology: v6e:2x2x1
jax: 0.10.0
libtpu: 0.0.40
codegen_flags: <defaults>
</compile_context>

<pallas_src>
import jax
import jax.numpy as jnp
from jax.experimental import pallas as pl
from jax.experimental.pallas import tpu as pltpu


def attack_mlp_kernel(x_ref,
                      w1_ref, b1_ref,
                      w2_ref, b2_ref,
                      w3_ref, b3_ref,
                      w4_ref, b4_ref,
                      o_ref):
    # fc1 + ReLU : (tm, dim_in)bf16 @ (dim_in, 512)bf16 -> (tm, 512) f32 acc
    h = jnp.dot(x_ref[...], w1_ref[...], preferred_element_type=jnp.float32)
    h = jnp.maximum(h + b1_ref[...], 0.0)
    # fc2 + ReLU : (tm, 512) @ (512, 128) -> (tm, 128)
    h = jnp.dot(h.astype(jnp.bfloat16), w2_ref[...],
                preferred_element_type=jnp.float32)
    h = jnp.maximum(h + b2_ref[...], 0.0)
    # fc3 + ReLU : (tm, 128) @ (128, 32) -> (tm, 32)
    h = jnp.dot(h.astype(jnp.bfloat16), w3_ref[...],
                preferred_element_type=jnp.float32)
    h = jnp.maximum(h + b3_ref[...], 0.0)
    # fc4 (no activation) : (tm, 32) @ (32, 2) -> (tm, 2)
    out = jnp.dot(h.astype(jnp.bfloat16), w4_ref[...],
                  preferred_element_type=jnp.float32) + b4_ref[...]
    o_ref[...] = out.astype(o_ref.dtype)


def _round_up(x, m):
    return ((x + m - 1) // m) * m


def attack_forward(x, params, *, tm=256):
    """params: dict with w1..w4 (in,out) and b1..b4 (1,out) in f32.
    x: any shape reshapeable to (-1, dim_in), mirroring x.view(-1, dim_in)."""
    dim_in = params["w1"].shape[0]
    x2d = x.reshape(-1, dim_in).astype(jnp.float32)
    B = x2d.shape[0]

    # Batch tile: large by default, shrunk for tiny batches, multiple of 8 (sublane).
    tm_eff = min(tm, _round_up(B, 8))
    B_pad = _round_up(B, tm_eff)
    if B_pad != B:
        x2d = jnp.pad(x2d, ((0, B_pad - B), (0, 0)))

    # bf16 for streamed activations and resident weights; biases stay f32.
    x_bf = x2d.astype(jnp.bfloat16)
    w = {k: params[k].astype(jnp.bfloat16) for k in ("w1", "w2", "w3", "w4")}
    b = {k: params[k].astype(jnp.float32) for k in ("b1", "b2", "b3", "b4")}

    def full_spec(shape):
        # Whole array as one block, identical every grid step (stays resident).
        return pl.BlockSpec(shape, lambda i: (0, 0))

    grid = (B_pad // tm_eff,)

    grid_spec = pltpu.PrefetchScalarGridSpec(
        num_scalar_prefetch=0,
        grid=grid,
        in_specs=[
            pl.BlockSpec((tm_eff, dim_in), lambda i: (i, 0)),   # x batch tile
            full_spec(w["w1"].shape), full_spec(b["b1"].shape),
            full_spec(w["w2"].shape), full_spec(b["b2"].shape),
            full_spec(w["w3"].shape), full_spec(b["b3"].shape),
            full_spec(w["w4"].shape), full_spec(b["b4"].shape),
        ],
        out_specs=pl.BlockSpec((tm_eff, 2), lambda i: (i, 0)),
    )

    flops = 2 * B_pad * (dim_in * 512 + 512 * 128 + 128 * 32 + 32 * 2)
    weight_bytes = (sum(int(v.size) for v in w.values()) * 2
                    + sum(int(v.size) for v in b.values()) * 4)
    bytes_accessed = B_pad * dim_in * 2 + B_pad * 2 * 4 + weight_bytes

    out = pl.pallas_call(
        attack_mlp_kernel,
        out_shape=jax.ShapeDtypeStruct((B_pad, 2), jnp.float32),
        grid_spec=grid_spec,
        compiler_params=pltpu.CompilerParams(
            dimension_semantics=("parallel",)),
        cost_estimate=pl.CostEstimate(
            flops=int(flops),
            transcendentals=0,
            bytes_accessed=int(bytes_accessed)),
    )(x_bf,
      w["w1"], b["b1"],
      w["w2"], b["b2"],
      w["w3"], b["b3"],
      w["w4"], b["b4"])

    return out[:B]


def init_params(key, dim_in):
    """Synthetic init mimicking nn.Linear's U(-1/sqrt(fan_in), 1/sqrt(fan_in))."""
    sizes = [(dim_in, 512), (512, 128), (128, 32), (32, 2)]
    params = {}
    for li, (fan_in, fan_out) in enumerate(sizes, start=1):
        key, kw, kb = jax.random.split(key, 3)
        bound = 1.0 / (fan_in ** 0.5)
        params[f"w{li}"] = jax.random.uniform(
            kw, (fan_in, fan_out), jnp.float32, -bound, bound)
        params[f"b{li}"] = jax.random.uniform(
            kb, (1, fan_out), jnp.float32, -bound, bound)
    return params


def reference_forward(x, params):
    dim_in = params["w1"].shape[0]
    h = x.reshape(-1, dim_in).astype(jnp.float32)
    h = jnp.maximum(h @ params["w1"] + params["b1"], 0.0)
    h = jnp.maximum(h @ params["w2"] + params["b2"], 0.0)
    h = jnp.maximum(h @ params["w3"] + params["b3"], 0.0)
    return h @ params["w4"] + params["b4"]


if __name__ == "__main__":
    dim_in = 32
    key = jax.random.PRNGKey(0)
    key, kx1, kx2 = jax.random.split(key, 3)
    params = init_params(key, dim_in)

    # Case 1: small input (5, 4, 32) -> flattened to (20, 32); exercises the
    # non-multiple-of-tile padding path (pads 20 -> 24 rows).
    x1 = jax.random.normal(kx1, (5, 4, dim_in), jnp.float32)
    out1 = jax.block_until_ready(attack_forward(x1, params))
    ref1 = reference_forward(x1, params)
    assert out1.shape == (20, 2), out1.shape
    assert jnp.allclose(out1, ref1, atol=3e-2, rtol=3e-2), "mismatch (case 1)"

    # Case 2: batch larger than one tile (300 rows) -> multi-step grid + padding.
    x2 = jax.random.normal(kx2, (300, dim_in), jnp.float32)
    out2 = jax.block_until_ready(attack_forward(x2, params))
    ref2 = reference_forward(x2, params)
    assert out2.shape == (300, 2), out2.shape
    assert jnp.allclose(out2, ref2, atol=3e-2, rtol=3e-2), "mismatch (case 2)"

    print("KERNEL_OK")
</pallas_src>

<mosaic_0001>
module attributes {stable_mosaic.version = 11 : i64} {
  func.func @attack_mlp_kernel(%arg0: i32, %arg1: memref<24x32xbf16, #tpu.memory_space<vmem>>, %arg2: memref<32x512xbf16, #tpu.memory_space<vmem>>, %arg3: memref<1x512xf32, #tpu.memory_space<vmem>>, %arg4: memref<512x128xbf16, #tpu.memory_space<vmem>>, %arg5: memref<1x128xf32, #tpu.memory_space<vmem>>, %arg6: memref<128x32xbf16, #tpu.memory_space<vmem>>, %arg7: memref<1x32xf32, #tpu.memory_space<vmem>>, %arg8: memref<32x2xbf16, #tpu.memory_space<vmem>>, %arg9: memref<1x2xf32, #tpu.memory_space<vmem>>, %arg10: memref<24x2xf32, #tpu.memory_space<vmem>>) attributes {dimension_semantics = [#tpu.dimension_semantics<parallel>], iteration_bounds = array<i64: 1>, scalar_prefetch = 0 : i64, scratch_operands = 0 : i64, tpu.core_type = #tpu.core_type<tc>, window_params = [{transform_indices = @transform_0, window_bounds = array<i64: 24, 32>}, {pipeline_mode = #tpu.pipeline_mode<synchronous>, transform_indices = @transform_1, window_bounds = array<i64: 32, 512>}, {pipeline_mode = #tpu.pipeline_mode<synchronous>, transform_indices = @transform_2, window_bounds = array<i64: 1, 512>}, {pipeline_mode = #tpu.pipeline_mode<synchronous>, transform_indices = @transform_3, window_bounds = array<i64: 512, 128>}, {pipeline_mode = #tpu.pipeline_mode<synchronous>, transform_indices = @transform_4, window_bounds = array<i64: 1, 128>}, {pipeline_mode = #tpu.pipeline_mode<synchronous>, transform_indices = @transform_5, window_bounds = array<i64: 128, 32>}, {pipeline_mode = #tpu.pipeline_mode<synchronous>, transform_indices = @transform_6, window_bounds = array<i64: 1, 32>}, {pipeline_mode = #tpu.pipeline_mode<synchronous>, transform_indices = @transform_7, window_bounds = array<i64: 32, 2>}, {pipeline_mode = #tpu.pipeline_mode<synchronous>, transform_indices = @transform_8, window_bounds = array<i64: 1, 2>}, {transform_indices = @transform_9, window_bounds = array<i64: 24, 2>}]} {
    %c0 = arith.constant 0 : index
    %c0_0 = arith.constant 0 : index
    %0 = vector.load %arg1[%c0, %c0_0] : memref<24x32xbf16, #tpu.memory_space<vmem>>, vector<24x32xbf16>
    %c0_1 = arith.constant 0 : index
    %c0_2 = arith.constant 0 : index
    %1 = vector.load %arg2[%c0_1, %c0_2] : memref<32x512xbf16, #tpu.memory_space<vmem>>, vector<32x512xbf16>
    %cst = arith.constant dense<0.000000e+00> : vector<24x512xf32>
    %2 = tpu.matmul %0, %1, %cst {dimension_numbers = #tpu.dot_dimension_numbers<[1], [0], [0], [1], [0, 0, 1, 1], [], []>} : vector<24x32xbf16>, vector<32x512xbf16>, vector<24x512xf32> -> vector<24x512xf32>
    %c0_3 = arith.constant 0 : index
    %c0_4 = arith.constant 0 : index
    %3 = vector.load %arg3[%c0_3, %c0_4] : memref<1x512xf32, #tpu.memory_space<vmem>>, vector<1x512xf32>
    %4 = vector.broadcast %3 : vector<1x512xf32> to vector<24x512xf32>
    %5 = arith.addf %2, %4 : vector<24x512xf32>
    %cst_5 = arith.constant 0.000000e+00 : f32
    %6 = vector.broadcast %cst_5 : f32 to vector<24x512xf32>
    %7 = arith.maximumf %5, %6 : vector<24x512xf32>
    %8 = arith.truncf %7 : vector<24x512xf32> to vector<24x512xbf16>
    %c0_6 = arith.constant 0 : index
    %c0_7 = arith.constant 0 : index
    %9 = vector.load %arg4[%c0_6, %c0_7] : memref<512x128xbf16, #tpu.memory_space<vmem>>, vector<512x128xbf16>
    %cst_8 = arith.constant dense<0.000000e+00> : vector<24x128xf32>
    %10 = tpu.matmul %8, %9, %cst_8 {dimension_numbers = #tpu.dot_dimension_numbers<[1], [0], [0], [1], [0, 0, 1, 1], [], []>} : vector<24x512xbf16>, vector<512x128xbf16>, vector<24x128xf32> -> vector<24x128xf32>
    %c0_9 = arith.constant 0 : index
    %c0_10 = arith.constant 0 : index
    %11 = vector.load %arg5[%c0_9, %c0_10] : memref<1x128xf32, #tpu.memory_space<vmem>>, vector<1x128xf32>
    %12 = vector.broadcast %11 : vector<1x128xf32> to vector<24x128xf32>
    %13 = arith.addf %10, %12 : vector<24x128xf32>
    %cst_11 = arith.constant 0.000000e+00 : f32
    %14 = vector.broadcast %cst_11 : f32 to vector<24x128xf32>
    %15 = arith.maximumf %13, %14 : vector<24x128xf32>
    %16 = arith.truncf %15 : vector<24x128xf32> to vector<24x128xbf16>
    %c0_12 = arith.constant 0 : index
    %c0_13 = arith.constant 0 : index
    %17 = vector.load %arg6[%c0_12, %c0_13] : memref<128x32xbf16, #tpu.memory_space<vmem>>, vector<128x32xbf16>
    %cst_14 = arith.constant dense<0.000000e+00> : vector<24x32xf32>
    %18 = tpu.matmul %16, %17, %cst_14 {dimension_numbers = #tpu.dot_dimension_numbers<[1], [0], [0], [1], [0, 0, 1, 1], [], []>} : vector<24x128xbf16>, vector<128x32xbf16>, vector<24x32xf32> -> vector<24x32xf32>
    %c0_15 = arith.constant 0 : index
    %c0_16 = arith.constant 0 : index
    %19 = vector.load %arg7[%c0_15, %c0_16] : memref<1x32xf32, #tpu.memory_space<vmem>>, vector<1x32xf32>
    %20 = vector.broadcast %19 : vector<1x32xf32> to vector<24x32xf32>
    %21 = arith.addf %18, %20 : vector<24x32xf32>
    %cst_17 = arith.constant 0.000000e+00 : f32
    %22 = vector.broadcast %cst_17 : f32 to vector<24x32xf32>
    %23 = arith.maximumf %21, %22 : vector<24x32xf32>
    %24 = arith.truncf %23 : vector<24x32xf32> to vector<24x32xbf16>
    %c0_18 = arith.constant 0 : index
    %c0_19 = arith.constant 0 : index
    %25 = vector.load %arg8[%c0_18, %c0_19] : memref<32x2xbf16, #tpu.memory_space<vmem>>, vector<32x2xbf16>
    %cst_20 = arith.constant dense<0.000000e+00> : vector<24x2xf32>
    %26 = tpu.matmul %24, %25, %cst_20 {dimension_numbers = #tpu.dot_dimension_numbers<[1], [0], [0], [1], [0, 0, 1, 1], [], []>} : vector<24x32xbf16>, vector<32x2xbf16>, vector<24x2xf32> -> vector<24x2xf32>
    %c0_21 = arith.constant 0 : index
    %c0_22 = arith.constant 0 : index
    %27 = vector.load %arg9[%c0_21, %c0_22] : memref<1x2xf32, #tpu.memory_space<vmem>>, vector<1x2xf32>
    %28 = vector.broadcast %27 : vector<1x2xf32> to vector<24x2xf32>
    %29 = arith.addf %26, %28 : vector<24x2xf32>
    %c0_23 = arith.constant 0 : index
    %c0_24 = arith.constant 0 : index
    %30 = vector.load %arg10[%c0_23, %c0_24] : memref<24x2xf32, #tpu.memory_space<vmem>>, vector<24x2xf32>
    tpu.vector_store %arg10[%c0_23, %c0_24], %29 {strides = array<i32>} : memref<24x2xf32, #tpu.memory_space<vmem>>, vector<24x2xf32>,
    return
  }
  func.func @transform_0(%arg0: i32) -> (i32, i32) {
    %c0_i32 = arith.constant 0 : i32
    %c0_i32_0 = arith.constant 0 : i32
    return %arg0, %c0_i32 : i32, i32
  }
  func.func @transform_1(%arg0: i32) -> (i32, i32) {
    %c0_i32 = arith.constant 0 : i32
    %c0_i32_0 = arith.constant 0 : i32
    %c0_i32_1 = arith.constant 0 : i32
    return %c0_i32, %c0_i32_0 : i32, i32
  }
  func.func @transform_2(%arg0: i32) -> (i32, i32) {
    %c0_i32 = arith.constant 0 : i32
    %c0_i32_0 = arith.constant 0 : i32
    %c0_i32_1 = arith.constant 0 : i32
    return %c0_i32, %c0_i32_0 : i32, i32
  }
  func.func @transform_3(%arg0: i32) -> (i32, i32) {
    %c0_i32 = arith.constant 0 : i32
    %c0_i32_0 = arith.constant 0 : i32
    %c0_i32_1 = arith.constant 0 : i32
    return %c0_i32, %c0_i32_0 : i32, i32
  }
  func.func @transform_4(%arg0: i32) -> (i32, i32) {
    %c0_i32 = arith.constant 0 : i32
    %c0_i32_0 = arith.constant 0 : i32
    %c0_i32_1 = arith.constant 0 : i32
    return %c0_i32, %c0_i32_0 : i32, i32
  }
  func.func @transform_5(%arg0: i32) -> (i32, i32) {
    %c0_i32 = arith.constant 0 : i32
    %c0_i32_0 = arith.constant 0 : i32
    %c0_i32_1 = arith.constant 0 : i32
    return %c0_i32, %c0_i32_0 : i32, i32
  }
  func.func @transform_6(%arg0: i32) -> (i32, i32) {
    %c0_i32 = arith.constant 0 : i32
    %c0_i32_0 = arith.constant 0 : i32
    %c0_i32_1 = arith.constant 0 : i32
    return %c0_i32, %c0_i32_0 : i32, i32
  }
  func.func @transform_7(%arg0: i32) -> (i32, i32) {
    %c0_i32 = arith.constant 0 : i32
    %c0_i32_0 = arith.constant 0 : i32
    %c0_i32_1 = arith.constant 0 : i32
    return %c0_i32, %c0_i32_0 : i32, i32
  }
  func.func @transform_8(%arg0: i32) -> (i32, i32) {
    %c0_i32 = arith.constant 0 : i32
    %c0_i32_0 = arith.constant 0 : i32
    %c0_i32_1 = arith.constant 0 : i32
    return %c0_i32, %c0_i32_0 : i32, i32
  }
  func.func @transform_9(%arg0: i32) -> (i32, i32) {
    %c0_i32 = arith.constant 0 : i32
    %c0_i32_0 = arith.constant 0 : i32
    return %arg0, %c0_i32 : i32, i32
  }
}

</mosaic_0001>

<bundles_post_ra>
// kernel: tpu_custom_call.1
= control target key start
LH: loop header
LB: loop body
LE: loop exit
PB: predicated region body
PF: predicated region fallthrough
CT: control target
= control target key end

     0   :  { %14 = vsyncpa [#allocation3], 0  ;;  %s1072_s30 = smov [#allocation2]   ;;  %s1220_s0 = inlined_call_operand.vmem [shape: bf16[24,32], index: 0, kind: input, shape index: {}]   ;;  %s1221_s1 = inlined_call_operand.vmem [shape: bf16[32,512], index: 1, kind: input, shape index: {}]   ;;  %s1222_s2 = inlined_call_operand.vmem [shape: f32[1,512], index: 2, kind: input, shape index: {}]   ;;  %s1223_s3 = inlined_call_operand.hbm [shape: bf16[512,128], index: 3, kind: input, shape index: {}]   ;;  %s1224_s4 = inlined_call_operand.vmem [shape: f32[1,128], index: 4, kind: input, shape index: {}]   ;;  %s1225_s5 = inlined_call_operand.vmem [shape: bf16[128,32], index: 5, kind: input, shape index: {}]   ;;  %s1226_s6 = inlined_call_operand.vmem [shape: f32[1,32], index: 6, kind: input, shape index: {}]   ;;  %s1227_s7 = inlined_call_operand.vmem [shape: bf16[32,2], index: 7, kind: input, shape index: {}]   ;;  %s1228_s8 = inlined_call_operand.vmem [shape: f32[1,2], index: 8, kind: input, shape index: {}]   ;;  %s1229_s9 = inlined_call_operand.vmem [shape: f32[24,2], index: 9, kind: output, shape index: {}]  }
   0x1   :  { %s26_s10 = sshll.u32 %s1072_s30, 4  ;;  %s27_s10 = int_to_ptr.vmem [resolvable:$true] %s26_s10 }
   0x2   :  { %s1058_s11 = scalar_lea.vmem %s27_s10, 4096  ;;  %p1063_p1 = scmp.lt.s32.totalorder %s27_s10, %s27_s10 }
   0x3   :  { %p1059_p0 = scmp.ne.s32.totalorder %s27_s10, %s1058_s11  ;;  %p1064_p2 = scmp.lt.s32.totalorder %s1058_s11, %s1058_s11 }
   0x5   :  { %p1065_p3 = por %p1064_p2, %p1063_p1 }
   0x7   :  { %p1066_p4 = pnand %p1065_p3, %p1059_p0 }
   0x9   :  { %1069 = shalt.err (!%p1066_p4)
}
   0xa   :  { %s1073_s12 = smov 64   ;;  %s1074_s13 = smov 4  }
   0xb   :  { %32 = dma.hbm_to_vmem [thread:$0]  %s1223_s3, 4096, %s27_s10, [#allocation3], %s1073_s12, %s1073_s12, %s1074_s13  }
   0xc   :  { %1070 = dma.done.wait [#allocation3], 4096  }
   0xd   :  { %1071 = vsyncadd [#allocation3], 4294963200  ;;  %v1075_v0 = vmov 0   ;;  %v994_v1 = vld [vmem:[%s1221_s1 + $0x24] ss:$16 sps:$4 sm:$0xff]   ;;  %v1008_v10 = vld [vmem:[#allocation2 + $0x78] sm:$0xff]   ;;  %v60_v44 = vlaneseq }
   0xe   :  { %167 = vmatprep.mubr.bf16.mxu0 %v1075_v0  ;;  %218 = vmatprep.mubr.bf16.mxu1 %v1075_v0  ;;  %v996_v2 = vld [vmem:[%s1221_s1 + $0x2c] ss:$16 sps:$4 sm:$0xff]   ;;  %v998_v3 = vld [vmem:[%s1221_s1 + $0x20] ss:$16 sps:$4 sm:$0xff]   ;;  %v999_v4 = vld [vmem:[%s1221_s1 + $0x28] ss:$16 sps:$4 sm:$0xff]  }
   0xf   :  { %147 = vmatprep.subr.bf16.mxu0 %v994_v1  ;;  %198 = vmatprep.subr.bf16.mxu1 %v996_v2  ;;  %v1000_v5 = vld [vmem:[%s1221_s1 + $0x4] ss:$16 sps:$4 sm:$0xff]   ;;  %v1002_v6 = vld [vmem:[%s1221_s1 + $0xc] ss:$16 sps:$4 sm:$0xff]   ;;  %v1004_v7 = vld [vmem:[%s1221_s1] ss:$16 sps:$4 sm:$0xff]  }
  0x10   :  { %148 = vmatpush1.bf16.msra.mxu0 %v998_v3  ;;  %199 = vmatpush1.bf16.msra.mxu1 %v999_v4  ;;  %v1005_v8 = vld [vmem:[%s1221_s1 + $0x8] ss:$16 sps:$4 sm:$0xff]   ;;  %v1006_v9 = vld [vmem:[%s1220_s0] sm:$0xff]   ;;  %vm128_vm0 = vcmask 261120   ;;  %v1012_v14 = vld [vmem:[#allocation2 + $0x70] sm:$0xff]   ;;  %v61_v45 = vshrl.u32 %v60_v44, 7 }
  0x11   :  { %149 = vmatprep.subr.bf16.mxu0 %v1000_v5  ;;  %200 = vmatprep.subr.bf16.mxu1 %v1002_v6  ;;  %v1009_v11 = vld [vmem:[#allocation2 + $0xf8] sm:$0xff]   ;;  %v1013_v15 = vld [vmem:[#allocation2 + $0xf0] sm:$0xff]   ;;  %v1007_v16 = vld [vmem:[%s1220_s0 + $0x8] ss:$0 sps:$4 sm:$0xff]   ;;  %vm822_vm1 = vcmask 15360  }
  0x12   :  { %v1010_v12 = vld [vmem:[#allocation2 + $0x38] sm:$0xff]   ;;  %v1014_v17 = vld [vmem:[#allocation2 + $0x30] sm:$0xff]   ;;  %v1016_v19 = vld [vmem:[#allocation2 + $0x68] sm:$0xff]   ;;  %v66_v46 = vsub.s32 1, %v61_v45  ;;  %v74_v47 = vsub.s32 3, %v61_v45  ;;  %v62_v48 = vsub.s32 0, %v61_v45 }
  0x13   :  { %v1011_v13 = vld [vmem:[#allocation2 + $0xb8] sm:$0xff]   ;;  %v1015_v18 = vld [vmem:[#allocation2 + $0xb0] sm:$0xff]   ;;  %v1017_v20 = vld [vmem:[#allocation2 + $0xe8] sm:$0xff]   ;;  %v70_v49 = vsub.s32 2, %v61_v45 }
  0x14   :  { %150 = vmatpush1.bf16.msra.mxu0 %v1004_v7  ;;  %201 = vmatpush1.bf16.msra.mxu1 %v1005_v8  ;;  %v1018_v21 = vld [vmem:[#allocation2 + $0x28] sm:$0xff]   ;;  %v1020_v23 = vld [vmem:[#allocation2 + $0x60] sm:$0xff]   ;;  %v1024_v27 = vld [vmem:[#allocation2 + $0x58] sm:$0xff]  }
  0x15   :  { %892 = vmatprep.subr.bf16.mxu0 %v1008_v10  ;;  %920 = vmatprep.subr.bf16.mxu1 %v1009_v11  ;;  %v1019_v22 = vld [vmem:[#allocation2 + $0xa8] sm:$0xff]   ;;  %v1021_v24 = vld [vmem:[#allocation2 + $0xe0] sm:$0xff]   ;;  %v1025_v28 = vld [vmem:[#allocation2 + $0xd8] sm:$0xff]  }
  0x16   :  { %v1022_v25 = vld [vmem:[#allocation2 + $0x20] sm:$0xff]   ;;  %v1026_v29 = vld [vmem:[#allocation2 + $0x18] sm:$0xff]   ;;  %v1028_v31 = vld [vmem:[#allocation2 + $0x50] sm:$0xff]  }
  0x17   :  { %841 = vmatmul.mubr.msk.bf16.vlgmr.msra.gmra.mxu0 %vm128_vm0, %v1006_v9  ;;  %843 = vmatmul.mubr.msk.bf16.vlgmr.msra.gmra.mxu1 %vm128_vm0, %v1006_v9  ;;  %v1023_v26 = vld [vmem:[#allocation2 + $0xa0] sm:$0xff]   ;;  %v1027_v30 = vld [vmem:[#allocation2 + $0x98] sm:$0xff]   ;;  %v1029_v32 = vld [vmem:[#allocation2 + $0xd0] sm:$0xff]  }
  0x18   :  { %177 = vmatprep.mubr.bf16.mxu0 %v1075_v0  ;;  %228 = vmatprep.mubr.bf16.mxu1 %v1075_v0  ;;  %v1030_v33 = vld [vmem:[#allocation2 + $0x10] sm:$0xff]   ;;  %v1032_v35 = vld [vmem:[#allocation2 + $0x48] sm:$0xff]   ;;  %v1036_v39 = vld [vmem:[#allocation2 + $0x40] sm:$0xff]  }
  0x19   :  { %893 = vmatpush3.bf16.msra.mxu0 %v1010_v12  ;;  %921 = vmatpush3.bf16.msra.mxu1 %v1011_v13  ;;  %v1031_v34 = vld [vmem:[#allocation2 + $0x90] sm:$0xff]   ;;  %v1033_v36 = vld [vmem:[#allocation2 + $0xc8] sm:$0xff]   ;;  %v1037_v40 = vld [vmem:[#allocation2 + $0xc0] sm:$0xff]  }
  0x1a   :  { %894 = vmatprep.subr.bf16.mxu0 %v1012_v14  ;;  %922 = vmatprep.subr.bf16.mxu1 %v1013_v15  ;;  %v1034_v37 = vld [vmem:[#allocation2 + $0x8] sm:$0xff]   ;;  %v1038_v41 = vld [vmem:[#allocation2] sm:$0xff]   ;;  %v1166_v43 = vld [vmem:[%s1225_s5 + $0x38] sm:$0xff]  }
  0x1b   :  { %v1035_v38 = vld [vmem:[#allocation2 + $0x88] sm:$0xff]   ;;  %v1039_v42 = vld [vmem:[#allocation2 + $0x80] sm:$0xff]  }
  0x1c   :  { %v58_v50 = vld [vmem:[%s1222_s2] sm:$0xf]  ;;  %v1046_v44 = vld [vmem:[%s1225_s5 + $0x8] sm:$0xff]  }
  0x1d   :  { %895 = vmatpush3.bf16.msra.mxu0 %v1014_v17  ;;  %923 = vmatpush3.bf16.msra.mxu1 %v1015_v18  ;;  %v67_v53 = vrot.slane %v58_v50, %v66_v46  ;;  %v75_v54 = vrot.slane %v58_v50, %v74_v47  ;;  %v63_v55 = vrot.slane %v58_v50, %v62_v48  ;;  %v1047_v45 = vld [vmem:[%s1225_s5] sm:$0xff]   ;;  %v1048_v46 = vld [vmem:[%s1227_s7 + $0x8] sm:$0xff]  }
  0x1e   :  { %896 = vmatprep.subr.bf16.mxu0 %v1016_v19  ;;  %924 = vmatprep.subr.bf16.mxu1 %v1017_v20  ;;  %v71_v56 = vrot.slane %v58_v50, %v70_v49  ;;  %v845_v49 = vld [vmem:[%s1224_s4] ss:$0 sm:$0xff] }
  0x1f   :  { %842 = vmatmul.mubr.msk.bf16.gmra.mxu0 %vm128_vm0, %v1007_v16  ;;  %844 = vmatmul.mubr.msk.bf16.gmra.mxu1 %vm128_vm0, %v1007_v16 }
  0x21   :  { %897 = vmatpush3.bf16.msra.mxu0 %v1018_v21  ;;  %925 = vmatpush3.bf16.msra.mxu1 %v1019_v22 }
  0x22   :  { %898 = vmatprep.subr.bf16.mxu0 %v1020_v23  ;;  %926 = vmatprep.subr.bf16.mxu1 %v1021_v24 }
  0x25   :  { %899 = vmatpush3.bf16.msra.mxu0 %v1022_v25  ;;  %927 = vmatpush3.bf16.msra.mxu1 %v1023_v26 }
  0x26   :  { %900 = vmatprep.subr.bf16.mxu0 %v1024_v27  ;;  %928 = vmatprep.subr.bf16.mxu1 %v1025_v28 }
  0x29   :  { %901 = vmatpush3.bf16.msra.mxu0 %v1026_v29  ;;  %929 = vmatpush3.bf16.msra.mxu1 %v1027_v30  ;;  %v1041_v29 = vld [vmem:[%s1225_s5 + $0x30] sm:$0xff]  }
  0x2a   :  { %902 = vmatprep.subr.bf16.mxu0 %v1028_v31  ;;  %930 = vmatprep.subr.bf16.mxu1 %v1029_v32 }
  0x2d   :  { %903 = vmatpush3.bf16.msra.mxu0 %v1030_v33  ;;  %931 = vmatpush3.bf16.msra.mxu1 %v1031_v34 }
  0x2e   :  { %904 = vmatprep.subr.bf16.mxu0 %v1032_v35  ;;  %932 = vmatprep.subr.bf16.mxu1 %v1033_v36 }
  0x31   :  { %905 = vmatpush3.bf16.msra.mxu0 %v1034_v37  ;;  %933 = vmatpush3.bf16.msra.mxu1 %v1035_v38  ;;  %v1042_v38 = vld [vmem:[%s1225_s5 + $0x28] sm:$0xff]  }
  0x32   :  { %906 = vmatprep.subr.bf16.mxu0 %v1036_v39  ;;  %934 = vmatprep.subr.bf16.mxu1 %v1037_v40 }
  0x35   :  { %907 = vmatpush3.bf16.msra.mxu0 %v1038_v41  ;;  %935 = vmatpush3.bf16.msra.mxu1 %v1039_v42  ;;  %v1043_v41 = vld [vmem:[%s1225_s5 + $0x20] sm:$0xff]   ;;  %v1044_v42 = vld [vmem:[%s1225_s5 + $0x18] sm:$0xff]  }
  0x36   :  { %962 = vmatprep.subr.bf16.mxu0 %v1166_v43  ;;  %982 = vmatprep.subr.bf16.mxu1 %v1048_v46 }
  0xd7   :  { %v169_v51 = vpop.f32.mrf.mxu0  ;;  %v220_v52 = vpop.f32.mrf.mxu1 }
  0xd8   :  { %v170_v1 = vadd.f32 %v169_v51, %v63_v55  ;;  %v221_v2 = vadd.f32 %v220_v52, %v71_v56 }
  0xd9   :  { %v171_v57 = vpop.f32.mrf.mxu0  ;;  %v222_v58 = vpop.f32.mrf.mxu1 }
  0xda   :  { %v172_v61 = vadd.f32 %v171_v57, %v67_v53  ;;  %v223_v62 = vadd.f32 %v222_v58, %v75_v54  ;;  %v237_v15 = vmax.f32 %v170_v1, 0.0  ;;  %v239_v16 = vmax.f32 %v221_v2, 0.0 }
  0xdb   :  { %v173_v59 = vpop.f32.mrf.mxu0  ;;  %v224_v60 = vpop.f32.mrf.mxu1 }
  0xdc   :  { %v174_v63 = vadd.f32 %v173_v59, %v63_v55  ;;  %v225_v0 = vadd.f32 %v224_v60, %v71_v56  ;;  %v238_v11 = vmax.f32 %v172_v61, 0.0  ;;  %v240_v12 = vmax.f32 %v223_v62, 0.0 }
  0xdd   :  { %v175_v3 = vpop.f32.mrf.mxu0  ;;  %v226_v4 = vpop.f32.mrf.mxu1 }
  0xde   :  { %v176_v5 = vadd.f32 %v175_v3, %v67_v53  ;;  %v227_v6 = vadd.f32 %v226_v4, %v75_v54  ;;  %v241_v7 = vmax.f32 %v174_v63, 0.0  ;;  %v243_v8 = vmax.f32 %v225_v0, 0.0 }
  0xdf   :  { %v179_v9 = vpop.f32.mrf.mxu0  ;;  %v230_v10 = vpop.f32.mrf.mxu1 }
  0xe0   :  { %v242_v13 = vmax.f32 %v176_v5, 0.0  ;;  %v244_v14 = vmax.f32 %v227_v6, 0.0  ;;  %v231_v17 = vadd.f32 %v230_v10, %v71_v56  ;;  %v249_v24 = vpack.c.bf16 %v241_v7, %v237_v15 }
  0xe1   :  { %v181_v18 = vpop.f32.mrf.mxu0  ;;  %v232_v19 = vpop.f32.mrf.mxu1  ;;  %v251_v25 = vpack.c.bf16 %v243_v8, %v239_v16  ;;  %v180_v26 = vadd.f32 %v179_v9, %v63_v55 }
  0xe2   :  { %v250_v20 = vpack.c.bf16 %v242_v13, %v238_v11  ;;  %v252_v21 = vpack.c.bf16 %v244_v14, %v240_v12  ;;  %v182_v22 = vadd.f32 %v181_v18, %v67_v53  ;;  %v233_v23 = vadd.f32 %v232_v19, %v75_v54  ;;  %v878_v19 = vld [vmem:[%s1226_s6] ss:$0 sm:$0xff] }
  0xe3   :  { %v183_v27 = vpop.f32.mrf.mxu0  ;;  %v234_v28 = vpop.f32.mrf.mxu1  ;;  %v247_v32 = vmax.f32 %v231_v17, 0.0  ;;  %v245_v37 = vmax.f32 %v180_v26, 0.0  ;;  %v1049_v17 = vld [vmem:[%s1227_s7] sm:$0xff]  }
  0xe4   :  { %v246_v30 = vmax.f32 %v182_v22, 0.0  ;;  %v248_v31 = vmax.f32 %v233_v23, 0.0  ;;  %552 = vmatprep.mubr.bf16.mxu0 %v250_v20  ;;  %600 = vmatprep.mubr.bf16.mxu1 %v252_v21 }
  0xe5   :  { %v184_v33 = vpop.f32.mrf.mxu0  ;;  %v235_v34 = vpop.f32.mrf.mxu1  ;;  %553 = vmatmul.mubr.bf16.vlgmr.msra.gmra.mxu0 %v249_v24  ;;  %601 = vmatmul.mubr.bf16.vlgmr.msra.gmra.mxu1 %v251_v25  ;;  %v255_v39 = vpack.c.bf16 %v247_v32, %v247_v32  ;;  %v253_v40 = vpack.c.bf16 %v245_v37, %v245_v37 }
  0xe6   :  { %v254_v35 = vpack.c.bf16 %v246_v30, %v246_v30  ;;  %v256_v36 = vpack.c.bf16 %v248_v31, %v248_v31  ;;  %963 = vmatpush3.bf16.msra.mxu0 %v1166_v43  ;;  %v1045_v43 = vld [vmem:[%s1225_s5 + $0x10] sm:$0xff]   ;;  %983 = vmatpush3.bf16.msra.mxu1 %v1048_v46  ;;  %v887_v31 = vld [vmem:[%s1228_s8] ss:$0 sm:$0xff] }
  0xe7   :  { %964 = vmatprep.subr.bf16.mxu0 %v1041_v29  ;;  %984 = vmatprep.subr.bf16.mxu1 %v1049_v17 }
  0xe8   :  { %560 = vmatprep.mubr.bf16.mxu0 %v254_v35  ;;  %608 = vmatprep.mubr.bf16.mxu1 %v256_v36 }
  0xea   :  { %965 = vmatpush3.bf16.msra.mxu0 %v1041_v29  ;;  %985 = vmatpush3.bf16.msra.mxu1 %v1049_v17 }
  0xeb   :  { %966 = vmatprep.subr.bf16.mxu0 %v1042_v38 }
  0xed   :  { %561 = vmatmul.mubr.bf16.gmra.mxu0 %v253_v40  ;;  %609 = vmatmul.mubr.bf16.gmra.mxu1 %v255_v39 }
  0xee   :  { %967 = vmatpush3.bf16.msra.mxu0 %v1042_v38 }
  0xef   :  { %968 = vmatprep.subr.bf16.mxu0 %v1043_v41 }
  0xf2   :  { %969 = vmatpush3.bf16.msra.mxu0 %v1043_v41 }
  0xf3   :  { %970 = vmatprep.subr.bf16.mxu0 %v1044_v42 }
  0xf6   :  { %971 = vmatpush3.bf16.msra.mxu0 %v1044_v42 }
  0xf7   :  { %972 = vmatprep.subr.bf16.mxu0 %v1045_v43 }
  0xfa   :  { %973 = vmatpush3.bf16.msra.mxu0 %v1045_v43 }
  0xfb   :  { %974 = vmatprep.subr.bf16.mxu0 %v1046_v44 }
  0xfe   :  { %975 = vmatpush3.bf16.msra.mxu0 %v1046_v44 }
  0xff   :  { %976 = vmatprep.subr.bf16.mxu0 %v1047_v45 }
 0x102   :  { %977 = vmatpush3.bf16.msra.mxu0 %v1047_v45 }
 0x1a5   :  { %v908_v47 = vpop.f32.mrf.mxu0  ;;  %v936_v48 = vpop.f32.mrf.mxu1 }
 0x1a7   :  { %v909_v50 = vpop.f32.mrf.mxu0  ;;  %v937_v51 = vpop.f32.mrf.mxu1 }
 0x1a8   :  { %v910_v52 = vadd.f32 %v909_v50, %v908_v47  ;;  %v938_v58 = vadd.f32 %v937_v51, %v936_v48 }
 0x1a9   :  { %v911_v53 = vpop.f32.mrf.mxu0  ;;  %v939_v54 = vpop.f32.mrf.mxu1 }
 0x1aa   :  { %v555_v55 = vadd.f32 %v910_v52, %v845_v49 }
 0x1ab   :  { %v912_v56 = vpop.f32.mrf.mxu0  ;;  %v940_v57 = vpop.f32.mrf.mxu1 }
 0x1ac   :  { %v913_v59 = vadd.f32 %v912_v56, %v911_v53  ;;  %v603_v62 = vadd.f32 %v938_v58, %v555_v55  ;;  %v941_v0 = vadd.f32 %v940_v57, %v939_v54 }
 0x1ad   :  { %v914_v60 = vpop.f32.mrf.mxu0  ;;  %v942_v61 = vpop.f32.mrf.mxu1 }
 0x1ae   :  { %v558_v63 = vadd.f32 %v913_v59, %v845_v49  ;;  %v616_v7 = vmax.f32 %v603_v62, 0.0 }
 0x1af   :  { %v915_v1 = vpop.f32.mrf.mxu0  ;;  %v943_v2 = vpop.f32.mrf.mxu1 }
 0x1b0   :  { %v606_v3 = vadd.f32 %v941_v0, %v558_v63  ;;  %v916_v4 = vadd.f32 %v915_v1, %v914_v60  ;;  %v944_v10 = vadd.f32 %v943_v2, %v942_v61 }
 0x1b1   :  { %v917_v5 = vpop.f32.mrf.mxu0  ;;  %v945_v6 = vpop.f32.mrf.mxu1 }
 0x1b2   :  { %v617_v8 = vmax.f32 %v606_v3, 0.0  ;;  %v563_v9 = vadd.f32 %v916_v4, %v845_v49 }
 0x1b3   :  { %v918_v11 = vpop.f32.mrf.mxu0  ;;  %v946_v12 = vpop.f32.mrf.mxu1 }
 0x1b4   :  { %v611_v13 = vadd.f32 %v944_v10, %v563_v9  ;;  %v619_v14 = vpack.c.bf16 %v617_v8, %v616_v7 }
 0x1b6   :  { %v618_v15 = vmax.f32 %v611_v13, 0.0  ;;  %978 = vmatprep.mubr.bf16.mxu0 %v619_v14 }
 0x1b8   :  { %v620_v16 = vpack.c.bf16 %v618_v15, %v618_v15 }
 0x1ba   :  { %979 = vmatmul.mubr.bf16.vlgmr.msra.gmra.mxu0 %v620_v16 }
 0x27a   :  { %v980_v18 = vpop.f32.mrf.mxu0 }
 0x27b   :  { %v735_v21 = vadd.f32 %v980_v18, %v878_v19 }
 0x27c   :  { %v726_v20 = vpop.f32.mrf.mxu0 }
 0x27d   :  { %v727_v23 = vadd.f32 %v878_v19, %v726_v20  ;;  %v742_v26 = vmax.f32 %v735_v21, 0.0 }
 0x27e   :  { %v981_v22 = vpop.f32.mrf.mxu0 }
 0x27f   :  { %v740_v27 = vmax.f32 %v727_v23, 0.0  ;;  %v744_v30 = vpack.c.bf16 %v742_v26, %v742_v26 }
 0x280   :  { %v729_v24 = vpop.f32.mrf.mxu0 }
 0x281   :  { %v730_v25 = vadd.f32 %v878_v19, %v729_v24 }
 0x283   :  { %v741_v28 = vmax.f32 %v730_v25, 0.0 }
 0x285   :  { %v743_v29 = vpack.c.bf16 %v741_v28, %v740_v27 }
 0x287   :  { %986 = vmatprep.mubr.msk.bf16.mxu1 %vm128_vm0, %v743_v29 }
 0x288   :  { %987 = vmatmul.mubr.msk.bf16.vlgmr.msra.gmra.mxu1 %vm128_vm0, %v744_v30 }
 0x348   :  { %v988_v32 = vpop.f32.mrf.mxu1 }
 0x349   :  { %v817_v33 = vadd.f32 %v988_v32, %v887_v31 }
 0x34a   :  { %v808_v34 = vpop.f32.mrf.mxu1 }
 0x34b   :  { %825 = vst.msk [vmem:[%s1229_s9 + $0x10] sm:$0xff] %vm822_vm1, %v817_v33  ;;  %v809_v35 = vadd.f32 %v887_v31, %v808_v34 }
 0x34c   :  { %v989_v36 = vpop.f32.mrf.mxu1 }
 0x34d   :  { %823 = vst.msk [vmem:[%s1229_s9] sm:$0xff] %vm822_vm1, %v809_v35 }
 0x34e   :  { %v811_v37 = vpop.f32.mrf.mxu1 }
 0x34f   :  { %v812_v38 = vadd.f32 %v887_v31, %v811_v37 }
 0x351   :  { %824 = vst.msk [vmem:[%s1229_s9 + $0x8] sm:$0xff] %vm822_vm1, %v812_v38 }
 0x352   :  { %830 = vsyncpa [#allocation3], 1 }

</bundles_post_ra>
